<compile_context>
chip_gen: v7x
topology: tpu7x:2x2x1
jax: 0.10.0
libtpu: 0.0.40
codegen_flags: <defaults>
</compile_context>

<pallas_src>
import functools

import jax
import jax.numpy as jnp
from jax.experimental import pallas as pl
from jax.experimental.pallas import tpu as pltpu


def _spp_kernel(x_ref, o_ref, *, levels, pool_type):
    """One grid step = one nc tile. x_ref: (H, W, nc), o_ref: (R, nc)."""
    H, W, _nc = x_ref.shape
    is_avg = pool_type == "avg"

    def red(v, axis):
        return jnp.sum(v, axis=axis) if is_avg else jnp.max(v, axis=axis)

    # ---- single pass over the block: finest-level region reductions -------
    L = max(levels)
    hp_f, wp_f = H // L, W // L            # > 0, guaranteed by the wrapper
    fine = []
    for fi in range(L):
        # H slices are on the untiled leading axis -> free; reducing axis 0 is
        # a pure VPU elementwise combine of (W, nc) vreg planes.
        band = x_ref[fi * hp_f:(fi + 1) * hp_f, :, :].astype(jnp.float32)
        hband = red(band, 0)                               # (W, nc) f32
        fine.append([red(hband[fj * wp_f:(fj + 1) * wp_f, :], 0)
                     for fj in range(L)])                  # each (nc,) f32

    # ---- per-level outputs: derive from the fine grid when regions nest ---
    rows = []
    for level in levels:
        hp, wp = H // level, W // level    # matches int(H / level) in PyTorch
        inv = 1.0 / float(hp * wp)
        derivable = (hp % hp_f == 0 and wp % wp_f == 0
                     and level * hp <= L * hp_f and level * wp <= L * wp_f)
        for i in range(level):
            for j in range(level):
                if derivable:
                    parts = [fine[fi][fj]
                             for fi in range(i * hp // hp_f, (i + 1) * hp // hp_f)
                             for fj in range(j * wp // wp_f, (j + 1) * wp // wp_f)]
                    acc = parts[0]
                    for p in parts[1:]:
                        acc = acc + p if is_avg else jnp.maximum(acc, p)
                    pooled = acc * inv if is_avg else acc
                else:
                    # Non-nested level: direct static region reduce (rare).
                    region = x_ref[i * hp:(i + 1) * hp,
                                   j * wp:(j + 1) * wp, :].astype(jnp.float32)
                    pooled = red(region, (0, 1))
                    if is_avg:
                        pooled = pooled * inv
                rows.append(pooled)

    # One lane-dense store per grid step.
    o_ref[...] = jnp.stack(rows, axis=0).astype(o_ref.dtype)


def _round_up(x, m):
    return (x + m - 1) // m * m


def _vmem_budget_bytes():
    """Pipeline byte budget kept under the default scoped-VMEM limit."""
    try:
        kind = jax.devices()[0].device_kind.lower()
    except Exception:
        kind = ""
    if "v5" in kind:          # v5e: 16 MiB default scoped VMEM
        return 12 << 20
    return 24 << 20           # v6e / v7x: 32 MiB default scoped VMEM


def _pick_nc_tile(nc, h, w, dtype, *, want_multicore=True):
    """Largest lane-aligned nc tile whose *padded* (H, W, nc_tile) block still
    double-buffers inside the scoped-VMEM budget."""
    itemsize = jnp.dtype(dtype).itemsize
    sublane = {4: 8, 2: 16, 1: 32}.get(itemsize, 8)
    w_pad = max(_round_up(w, sublane), sublane)          # sublane padding of W
    per_buf = _vmem_budget_bytes() // 2                  # input double-buffered

    if nc <= 128:
        return nc                                        # single (padded) lane tile

    bytes_per_128_lanes = h * w_pad * 128 * itemsize     # lane padding accounted
    cap = max(128, (per_buf // bytes_per_128_lanes) * 128)
    if want_multicore and nc >= 256:
        # Keep >= 2 grid steps so both v7x TensorCores get work (no-op v5e/v6e).
        cap = min(cap, _round_up(pl.cdiv(nc, 2), 128))
    return nc if nc <= cap else cap


def spatial_pyramid_pooling(x, pool_type="max", levels=(1, 2, 4)):
    """x: (N, C, H, W) -> (N, C * sum(l*l), 1, 1), matching the PyTorch module."""
    if pool_type not in ("max", "avg"):
        raise ValueError(f"unsupported pool_type: {pool_type}")
    N, C, H, W = x.shape
    levels = tuple(int(l) for l in levels)
    for level in levels:
        if H // level < 1 or W // level < 1:
            raise ValueError(
                f"SpatialPyramidPooling: level {level} exceeds spatial dims {H}x{W}")
    R = sum(l * l for l in levels)
    NC = N * C

    # One-time channels-last relayout: lanes carry N*C, W on sublanes, H leading.
    x_cl = jnp.transpose(x, (2, 3, 0, 1)).reshape(H, W, NC)

    nc_tile = _pick_nc_tile(NC, H, W, x.dtype)
    grid = (pl.cdiv(NC, nc_tile),)

    kernel = functools.partial(_spp_kernel, levels=levels, pool_type=pool_type)
    out = pl.pallas_call(
        kernel,
        out_shape=jax.ShapeDtypeStruct((R, NC), x.dtype),
        grid=grid,
        in_specs=[pl.BlockSpec((H, W, nc_tile), lambda g: (0, 0, g))],
        out_specs=pl.BlockSpec((R, nc_tile), lambda g: (0, g)),
        compiler_params=pltpu.CompilerParams(
            dimension_semantics=("parallel",),
        ),
    )(x_cl)

    # (R, NC) -> (R, N, C) -> (N, R, C) -> (N, R*C, 1, 1): region-major blocks
    # of C channels, identical to torch.cat([...], dim=1) of (N, C, 1, 1).
    out = out.reshape(R, N, C).transpose(1, 0, 2).reshape(N, R * C, 1, 1)
    return out


if __name__ == "__main__":
    key = jax.random.PRNGKey(0)
    N, C, H, W = 2, 4, 16, 16
    levels = (1, 2, 4)
    x = jax.random.normal(key, (N, C, H, W), dtype=jnp.float32)

    def ref_spp(x, pool_type):
        parts = []
        for level in levels:
            hp, wp = int(H / level), int(W / level)
            for i in range(level):
                for j in range(level):
                    region = x[:, :, i * hp:(i + 1) * hp, j * wp:(j + 1) * wp]
                    if pool_type == "avg":
                        parts.append(jnp.mean(region, axis=(2, 3), keepdims=True))
                    else:
                        parts.append(jnp.max(region, axis=(2, 3), keepdims=True))
        return jnp.concatenate(parts, axis=1)

    R = sum(l * l for l in levels)

    out_max = jax.block_until_ready(spatial_pyramid_pooling(x, "max", levels))
    assert out_max.shape == (N, C * R, 1, 1), out_max.shape
    assert jnp.allclose(out_max, ref_spp(x, "max")), "max-pool mismatch vs reference"

    out_avg = jax.block_until_ready(spatial_pyramid_pooling(x, "avg", levels))
    assert out_avg.shape == (N, C * R, 1, 1), out_avg.shape
    assert jnp.allclose(out_avg, ref_spp(x, "avg"), rtol=1e-5, atol=1e-6), \
        "avg-pool mismatch vs reference"

    print("KERNEL_OK")
</pallas_src>

<mosaic_0001>
module attributes {stable_mosaic.version = 11 : i64} {
  func.func @_spp_kernel(%arg0: i32, %arg1: memref<16x16x8xf32, #tpu.memory_space<vmem>>, %arg2: memref<21x8xf32, #tpu.memory_space<vmem>>) attributes {dimension_semantics = [#tpu.dimension_semantics<parallel>], iteration_bounds = array<i64: 1>, scalar_prefetch = 0 : i64, scratch_operands = 0 : i64, tpu.core_type = #tpu.core_type<tc>, window_params = [{transform_indices = @transform_0, window_bounds = array<i64: 16, 16, 8>}, {transform_indices = @transform_1, window_bounds = array<i64: 21, 8>}]} {
    %c0 = arith.constant 0 : index
    %c0_0 = arith.constant 0 : index
    %c0_1 = arith.constant 0 : index
    %0 = vector.load %arg1[%c0, %c0_0, %c0_1] : memref<16x16x8xf32, #tpu.memory_space<vmem>>, vector<4x16x8xf32>
    %cst = arith.constant dense<0xFF800000> : vector<16x8xf32>
    %1 = vector.multi_reduction <maximumf>, %0, %cst [0] : vector<4x16x8xf32> to vector<16x8xf32>
    %2 = vector.extract_strided_slice %1 {offsets = [0, 0], sizes = [4, 8], strides = [1, 1]} : vector<16x8xf32> to vector<4x8xf32>
    %cst_2 = arith.constant dense<0xFF800000> : vector<8xf32>
    %3 = vector.multi_reduction <maximumf>, %2, %cst_2 [0] : vector<4x8xf32> to vector<8xf32>
    %4 = vector.extract_strided_slice %1 {offsets = [4, 0], sizes = [4, 8], strides = [1, 1]} : vector<16x8xf32> to vector<4x8xf32>
    %cst_3 = arith.constant dense<0xFF800000> : vector<8xf32>
    %5 = vector.multi_reduction <maximumf>, %4, %cst_3 [0] : vector<4x8xf32> to vector<8xf32>
    %6 = vector.extract_strided_slice %1 {offsets = [8, 0], sizes = [4, 8], strides = [1, 1]} : vector<16x8xf32> to vector<4x8xf32>
    %cst_4 = arith.constant dense<0xFF800000> : vector<8xf32>
    %7 = vector.multi_reduction <maximumf>, %6, %cst_4 [0] : vector<4x8xf32> to vector<8xf32>
    %8 = vector.extract_strided_slice %1 {offsets = [12, 0], sizes = [4, 8], strides = [1, 1]} : vector<16x8xf32> to vector<4x8xf32>
    %cst_5 = arith.constant dense<0xFF800000> : vector<8xf32>
    %9 = vector.multi_reduction <maximumf>, %8, %cst_5 [0] : vector<4x8xf32> to vector<8xf32>
    %c4 = arith.constant 4 : index
    %c0_6 = arith.constant 0 : index
    %c0_7 = arith.constant 0 : index
    %10 = vector.load %arg1[%c4, %c0_6, %c0_7] : memref<16x16x8xf32, #tpu.memory_space<vmem>>, vector<4x16x8xf32>
    %cst_8 = arith.constant dense<0xFF800000> : vector<16x8xf32>
    %11 = vector.multi_reduction <maximumf>, %10, %cst_8 [0] : vector<4x16x8xf32> to vector<16x8xf32>
    %12 = vector.extract_strided_slice %11 {offsets = [0, 0], sizes = [4, 8], strides = [1, 1]} : vector<16x8xf32> to vector<4x8xf32>
    %cst_9 = arith.constant dense<0xFF800000> : vector<8xf32>
    %13 = vector.multi_reduction <maximumf>, %12, %cst_9 [0] : vector<4x8xf32> to vector<8xf32>
    %14 = vector.extract_strided_slice %11 {offsets = [4, 0], sizes = [4, 8], strides = [1, 1]} : vector<16x8xf32> to vector<4x8xf32>
    %cst_10 = arith.constant dense<0xFF800000> : vector<8xf32>
    %15 = vector.multi_reduction <maximumf>, %14, %cst_10 [0] : vector<4x8xf32> to vector<8xf32>
    %16 = vector.extract_strided_slice %11 {offsets = [8, 0], sizes = [4, 8], strides = [1, 1]} : vector<16x8xf32> to vector<4x8xf32>
    %cst_11 = arith.constant dense<0xFF800000> : vector<8xf32>
    %17 = vector.multi_reduction <maximumf>, %16, %cst_11 [0] : vector<4x8xf32> to vector<8xf32>
    %18 = vector.extract_strided_slice %11 {offsets = [12, 0], sizes = [4, 8], strides = [1, 1]} : vector<16x8xf32> to vector<4x8xf32>
    %cst_12 = arith.constant dense<0xFF800000> : vector<8xf32>
    %19 = vector.multi_reduction <maximumf>, %18, %cst_12 [0] : vector<4x8xf32> to vector<8xf32>
    %c8 = arith.constant 8 : index
    %c0_13 = arith.constant 0 : index
    %c0_14 = arith.constant 0 : index
    %20 = vector.load %arg1[%c8, %c0_13, %c0_14] : memref<16x16x8xf32, #tpu.memory_space<vmem>>, vector<4x16x8xf32>
    %cst_15 = arith.constant dense<0xFF800000> : vector<16x8xf32>
    %21 = vector.multi_reduction <maximumf>, %20, %cst_15 [0] : vector<4x16x8xf32> to vector<16x8xf32>
    %22 = vector.extract_strided_slice %21 {offsets = [0, 0], sizes = [4, 8], strides = [1, 1]} : vector<16x8xf32> to vector<4x8xf32>
    %cst_16 = arith.constant dense<0xFF800000> : vector<8xf32>
    %23 = vector.multi_reduction <maximumf>, %22, %cst_16 [0] : vector<4x8xf32> to vector<8xf32>
    %24 = vector.extract_strided_slice %21 {offsets = [4, 0], sizes = [4, 8], strides = [1, 1]} : vector<16x8xf32> to vector<4x8xf32>
    %cst_17 = arith.constant dense<0xFF800000> : vector<8xf32>
    %25 = vector.multi_reduction <maximumf>, %24, %cst_17 [0] : vector<4x8xf32> to vector<8xf32>
    %26 = vector.extract_strided_slice %21 {offsets = [8, 0], sizes = [4, 8], strides = [1, 1]} : vector<16x8xf32> to vector<4x8xf32>
    %cst_18 = arith.constant dense<0xFF800000> : vector<8xf32>
    %27 = vector.multi_reduction <maximumf>, %26, %cst_18 [0] : vector<4x8xf32> to vector<8xf32>
    %28 = vector.extract_strided_slice %21 {offsets = [12, 0], sizes = [4, 8], strides = [1, 1]} : vector<16x8xf32> to vector<4x8xf32>
    %cst_19 = arith.constant dense<0xFF800000> : vector<8xf32>
    %29 = vector.multi_reduction <maximumf>, %28, %cst_19 [0] : vector<4x8xf32> to vector<8xf32>
    %c12 = arith.constant 12 : index
    %c0_20 = arith.constant 0 : index
    %c0_21 = arith.constant 0 : index
    %30 = vector.load %arg1[%c12, %c0_20, %c0_21] : memref<16x16x8xf32, #tpu.memory_space<vmem>>, vector<4x16x8xf32>
    %cst_22 = arith.constant dense<0xFF800000> : vector<16x8xf32>
    %31 = vector.multi_reduction <maximumf>, %30, %cst_22 [0] : vector<4x16x8xf32> to vector<16x8xf32>
    %32 = vector.extract_strided_slice %31 {offsets = [0, 0], sizes = [4, 8], strides = [1, 1]} : vector<16x8xf32> to vector<4x8xf32>
    %cst_23 = arith.constant dense<0xFF800000> : vector<8xf32>
    %33 = vector.multi_reduction <maximumf>, %32, %cst_23 [0] : vector<4x8xf32> to vector<8xf32>
    %34 = vector.extract_strided_slice %31 {offsets = [4, 0], sizes = [4, 8], strides = [1, 1]} : vector<16x8xf32> to vector<4x8xf32>
    %cst_24 = arith.constant dense<0xFF800000> : vector<8xf32>
    %35 = vector.multi_reduction <maximumf>, %34, %cst_24 [0] : vector<4x8xf32> to vector<8xf32>
    %36 = vector.extract_strided_slice %31 {offsets = [8, 0], sizes = [4, 8], strides = [1, 1]} : vector<16x8xf32> to vector<4x8xf32>
    %cst_25 = arith.constant dense<0xFF800000> : vector<8xf32>
    %37 = vector.multi_reduction <maximumf>, %36, %cst_25 [0] : vector<4x8xf32> to vector<8xf32>
    %38 = vector.extract_strided_slice %31 {offsets = [12, 0], sizes = [4, 8], strides = [1, 1]} : vector<16x8xf32> to vector<4x8xf32>
    %cst_26 = arith.constant dense<0xFF800000> : vector<8xf32>
    %39 = vector.multi_reduction <maximumf>, %38, %cst_26 [0] : vector<4x8xf32> to vector<8xf32>
    %40 = arith.maximumf %3, %5 : vector<8xf32>
    %41 = arith.maximumf %40, %7 : vector<8xf32>
    %42 = arith.maximumf %41, %9 : vector<8xf32>
    %43 = arith.maximumf %42, %13 : vector<8xf32>
    %44 = arith.maximumf %43, %15 : vector<8xf32>
    %45 = arith.maximumf %44, %17 : vector<8xf32>
    %46 = arith.maximumf %45, %19 : vector<8xf32>
    %47 = arith.maximumf %46, %23 : vector<8xf32>
    %48 = arith.maximumf %47, %25 : vector<8xf32>
    %49 = arith.maximumf %48, %27 : vector<8xf32>
    %50 = arith.maximumf %49, %29 : vector<8xf32>
    %51 = arith.maximumf %50, %33 : vector<8xf32>
    %52 = arith.maximumf %51, %35 : vector<8xf32>
    %53 = arith.maximumf %52, %37 : vector<8xf32>
    %54 = arith.maximumf %53, %39 : vector<8xf32>
    %55 = arith.maximumf %3, %5 : vector<8xf32>
    %56 = arith.maximumf %55, %13 : vector<8xf32>
    %57 = arith.maximumf %56, %15 : vector<8xf32>
    %58 = arith.maximumf %7, %9 : vector<8xf32>
    %59 = arith.maximumf %58, %17 : vector<8xf32>
    %60 = arith.maximumf %59, %19 : vector<8xf32>
    %61 = arith.maximumf %23, %25 : vector<8xf32>
    %62 = arith.maximumf %61, %33 : vector<8xf32>
    %63 = arith.maximumf %62, %35 : vector<8xf32>
    %64 = arith.maximumf %27, %29 : vector<8xf32>
    %65 = arith.maximumf %64, %37 : vector<8xf32>
    %66 = arith.maximumf %65, %39 : vector<8xf32>
    %67 = vector.shape_cast %54 : vector<8xf32> to vector<1x8xf32>
    %68 = vector.shape_cast %57 : vector<8xf32> to vector<1x8xf32>
    %69 = vector.shape_cast %60 : vector<8xf32> to vector<1x8xf32>
    %70 = vector.shape_cast %63 : vector<8xf32> to vector<1x8xf32>
    %71 = vector.shape_cast %66 : vector<8xf32> to vector<1x8xf32>
    %72 = vector.shape_cast %3 : vector<8xf32> to vector<1x8xf32>
    %73 = vector.shape_cast %5 : vector<8xf32> to vector<1x8xf32>
    %74 = vector.shape_cast %7 : vector<8xf32> to vector<1x8xf32>
    %75 = vector.shape_cast %9 : vector<8xf32> to vector<1x8xf32>
    %76 = vector.shape_cast %13 : vector<8xf32> to vector<1x8xf32>
    %77 = vector.shape_cast %15 : vector<8xf32> to vector<1x8xf32>
    %78 = vector.shape_cast %17 : vector<8xf32> to vector<1x8xf32>
    %79 = vector.shape_cast %19 : vector<8xf32> to vector<1x8xf32>
    %80 = vector.shape_cast %23 : vector<8xf32> to vector<1x8xf32>
    %81 = vector.shape_cast %25 : vector<8xf32> to vector<1x8xf32>
    %82 = vector.shape_cast %27 : vector<8xf32> to vector<1x8xf32>
    %83 = vector.shape_cast %29 : vector<8xf32> to vector<1x8xf32>
    %84 = vector.shape_cast %33 : vector<8xf32> to vector<1x8xf32>
    %85 = vector.shape_cast %35 : vector<8xf32> to vector<1x8xf32>
    %86 = vector.shape_cast %37 : vector<8xf32> to vector<1x8xf32>
    %87 = vector.shape_cast %39 : vector<8xf32> to vector<1x8xf32>
    %88 = tpu.concatenate %67, %68, %69, %70, %71, %72, %73, %74, %75, %76, %77, %78, %79, %80, %81, %82 in 0 : vector<1x8xf32>, vector<1x8xf32>, vector<1x8xf32>, vector<1x8xf32>, vector<1x8xf32>, vector<1x8xf32>, vector<1x8xf32>, vector<1x8xf32>, vector<1x8xf32>, vector<1x8xf32>, vector<1x8xf32>, vector<1x8xf32>, vector<1x8xf32>, vector<1x8xf32>, vector<1x8xf32>, vector<1x8xf32> -> vector<16x8xf32>
    %89 = tpu.concatenate %83, %84, %85, %86, %87 in 0 : vector<1x8xf32>, vector<1x8xf32>, vector<1x8xf32>, vector<1x8xf32>, vector<1x8xf32> -> vector<5x8xf32>
    %90 = tpu.concatenate %88, %89 in 0 : vector<16x8xf32>, vector<5x8xf32> -> vector<21x8xf32>
    %c0_27 = arith.constant 0 : index
    %c0_28 = arith.constant 0 : index
    %91 = vector.load %arg2[%c0_27, %c0_28] : memref<21x8xf32, #tpu.memory_space<vmem>>, vector<21x8xf32>
    tpu.vector_store %arg2[%c0_27, %c0_28], %90 {strides = array<i32>} : memref<21x8xf32, #tpu.memory_space<vmem>>, vector<21x8xf32>,
    return
  }
  func.func @transform_0(%arg0: i32) -> (i32, i32, i32) {
    %c0_i32 = arith.constant 0 : i32
    %c0_i32_0 = arith.constant 0 : i32
    %c0_i32_1 = arith.constant 0 : i32
    return %c0_i32, %c0_i32_0, %arg0 : i32, i32, i32
  }
  func.func @transform_1(%arg0: i32) -> (i32, i32) {
    %c0_i32 = arith.constant 0 : i32
    %c0_i32_0 = arith.constant 0 : i32
    return %c0_i32, %arg0 : i32, i32
  }
}

</mosaic_0001>

<bundles_post_ra>
// kernel: tpu_custom_call.1
= control target key start
LH: loop header
LB: loop body
LE: loop exit
PB: predicated region body
PF: predicated region fallthrough
CT: control target
= control target key end

     0   :  { %vm16_vm0 = vcmask 64512   ;;  %vm31_vm1 = vcmask 60416   ;;  %vm39_vm2 = vcmask 64516   ;;  %vm240_vm3 = vcmask 1040384   ;;  %s531_s0 = inlined_call_operand.vmem [shape: f32[16,16,8], index: 0, kind: input, shape index: {}]   ;;  %s532_s1 = inlined_call_operand.vmem [shape: f32[21,8], index: 1, kind: output, shape index: {}]  }
   0x1   :  { %v8_v0 = vld [vmem:[%s531_s0] sm:$0xff]  ;;  %v9_v1 = vld [vmem:[%s531_s0 + $0x8] sm:$0xff]  ;;  %v10_v2 = vld [vmem:[%s531_s0 + $0x10] sm:$0xff]  ;;  %vm242_vm4 = vcmask 1041408   ;;  %vm244_vm5 = vcmask 1042432   ;;  %vm246_vm6 = vcmask 1043456  }
   0x2   :  { %v11_v3 = vld [vmem:[%s531_s0 + $0x18] sm:$0xff]  ;;  %v12_v4 = vld [vmem:[%s531_s0 + $0x20] sm:$0xff]  ;;  %v13_v5 = vld [vmem:[%s531_s0 + $0x28] sm:$0xff]  ;;  %v17_v6 = vsel %vm16_vm0, %v8_v0, -inf  ;;  %v18_v7 = vsel %vm16_vm0, %v10_v2, -inf  ;;  %v24_v8 = vsel %vm16_vm0, %v9_v1, -inf }
   0x3   :  { %v14_v9 = vld [vmem:[%s531_s0 + $0x30] sm:$0xff]  ;;  %v15_v10 = vld [vmem:[%s531_s0 + $0x38] sm:$0xff]  ;;  %v19_v11 = vsel %vm16_vm0, %v12_v4, -inf  ;;  %v25_v12 = vsel %vm16_vm0, %v11_v3, -inf  ;;  %v26_v13 = vsel %vm16_vm0, %v13_v5, -inf  ;;  %v273_v14 = vld [vmem:[%s531_s0 + $0x40] sm:$0xff] }
   0x4   :  { %v20_v15 = vmax.f32 %v17_v6, %v19_v11  ;;  %v21_v16 = vsel %vm16_vm0, %v14_v9, -inf  ;;  %v27_v17 = vmax.f32 %v24_v8, %v26_v13  ;;  %v28_v18 = vsel %vm16_vm0, %v15_v10, -inf  ;;  %v274_v19 = vld [vmem:[%s531_s0 + $0x48] sm:$0xff]  ;;  %v275_v20 = vld [vmem:[%s531_s0 + $0x50] sm:$0xff]  ;;  %v276_v21 = vld [vmem:[%s531_s0 + $0x58] sm:$0xff] }
   0x5   :  { %v22_v22 = vmax.f32 %v18_v7, %v21_v16  ;;  %v29_v23 = vmax.f32 %v25_v12, %v28_v18  ;;  %v277_v24 = vld [vmem:[%s531_s0 + $0x60] sm:$0xff]  ;;  %v278_v25 = vld [vmem:[%s531_s0 + $0x68] sm:$0xff]  ;;  %v279_v26 = vld [vmem:[%s531_s0 + $0x70] sm:$0xff]  ;;  %v70_v27 = vsel %vm16_vm0, %v273_v14, -inf  ;;  %v71_v28 = vsel %vm16_vm0, %v275_v20, -inf }
   0x6   :  { %v280_v29 = vld [vmem:[%s531_s0 + $0x78] sm:$0xff]  ;;  %v72_v30 = vsel %vm16_vm0, %v277_v24, -inf  ;;  %v74_v31 = vsel %vm16_vm0, %v279_v26, -inf  ;;  %v77_v36 = vsel %vm16_vm0, %v274_v19, -inf  ;;  %v78_v37 = vsel %vm16_vm0, %v276_v21, -inf  ;;  %v281_v51 = vld [vmem:[%s531_s0 + $0x80] sm:$0xff] }
   0x7   :  { %v23_v32 = vmax.f32 %v20_v15, %v22_v22  ;;  %v30_v33 = vmax.f32 %v27_v17, %v29_v23  ;;  %v73_v34 = vmax.f32 %v70_v27, %v72_v30  ;;  %v75_v35 = vmax.f32 %v71_v28, %v74_v31  ;;  %v283_v2 = vld [vmem:[%s531_s0 + $0x90] sm:$0xff]  ;;  %v285_v3 = vld [vmem:[%s531_s0 + $0xa0] sm:$0xff]  ;;  %v282_v20 = vld [vmem:[%s531_s0 + $0x88] sm:$0xff] }
   0x8   :  { %v79_v38 = vsel %vm16_vm0, %v278_v25, -inf  ;;  %v81_v39 = vsel %vm16_vm0, %v280_v29, -inf  ;;  %v121_v61 = vsel %vm16_vm0, %v281_v51, -inf  ;;  %v122_v14 = vsel %vm16_vm0, %v283_v2, -inf  ;;  %v287_v21 = vld [vmem:[%s531_s0 + $0xb0] sm:$0xff]  ;;  %v284_v30 = vld [vmem:[%s531_s0 + $0x98] sm:$0xff] }
   0x9   :  { %v32_v40 = vsel %vm31_vm1, %v23_v32, -inf  ;;  %v40_v41 = vsel %vm39_vm2, %v23_v32, -inf  ;;  %v47_v42 = vsel %vm31_vm1, %v30_v33, -inf  ;;  %v54_v43 = vsel %vm39_vm2, %v30_v33, -inf  ;;  %v286_v31 = vld [vmem:[%s531_s0 + $0xa8] sm:$0xff]  ;;  %v288_v32 = vld [vmem:[%s531_s0 + $0xb8] sm:$0xff] }
   0xa   :  { %v33_v44 = vrot.slane %v32_v40, 4  ;;  %v41_v45 = vrot.slane %v40_v41, 4  ;;  %v48_v46 = vrot.slane %v47_v42, 4  ;;  %v55_v47 = vrot.slane %v54_v43, 4  ;;  %v293_v51 = vld [vmem:[%s531_s0 + $0xe0] sm:$0xff] }
   0xb   :  { %v76_v48 = vmax.f32 %v73_v34, %v75_v35  ;;  %v80_v49 = vmax.f32 %v77_v36, %v79_v38  ;;  %v82_v50 = vmax.f32 %v78_v37, %v81_v39  ;;  %v123_v15 = vsel %vm16_vm0, %v285_v3, -inf }
   0xc   :  { %v34_v52 = vmax.f32 %v32_v40, %v33_v44  ;;  %v42_v53 = vmax.f32 %v40_v41, %v41_v45  ;;  %v49_v54 = vmax.f32 %v47_v42, %v48_v46  ;;  %v56_v55 = vmax.f32 %v54_v43, %v55_v47  ;;  %v289_v41 = vld [vmem:[%s531_s0 + $0xc0] sm:$0xff]  ;;  %v291_v46 = vld [vmem:[%s531_s0 + $0xd0] sm:$0xff] }
   0xd   :  { %v83_v56 = vmax.f32 %v80_v49, %v82_v50  ;;  %v84_v57 = vsel %vm31_vm1, %v76_v48, -inf  ;;  %v91_v58 = vsel %vm39_vm2, %v76_v48, -inf  ;;  %v124_v34 = vmax.f32 %v121_v61, %v123_v15 }
   0xe   :  { %v50_v59 = vrot.slane %v49_v54, 2  ;;  %v57_v60 = vrot.slane %v56_v55, 2  ;;  %v85_v62 = vrot.slane %v84_v57, 4  ;;  %v92_v63 = vrot.slane %v91_v58, 4 }
   0xf   :  { %v98_v0 = vsel %vm31_vm1, %v83_v56, -inf  ;;  %v105_v1 = vsel %vm39_vm2, %v83_v56, -inf  ;;  %v35_v4 = vrot.slane %v34_v52, 2  ;;  %v43_v5 = vrot.slane %v42_v53, 2 }
  0x10   :  { %v51_v6 = vmax.f32 %v49_v54, %v50_v59  ;;  %v58_v7 = vmax.f32 %v56_v55, %v57_v60  ;;  %v86_v8 = vmax.f32 %v84_v57, %v85_v62  ;;  %v93_v9 = vmax.f32 %v91_v58, %v92_v63  ;;  %v290_v59 = vld [vmem:[%s531_s0 + $0xc8] sm:$0xff]  ;;  %v295_v60 = vld [vmem:[%s531_s0 + $0xf0] sm:$0xff] }
  0x11   :  { %v99_v10 = vrot.slane %v98_v0, 4  ;;  %v106_v11 = vrot.slane %v105_v1, 4  ;;  %v397_v22 = vmax.f32 %v34_v52, %v35_v4  ;;  %v399_v23 = vmax.f32 %v42_v53, %v43_v5  ;;  %v292_v5 = vld [vmem:[%s531_s0 + $0xd8] sm:$0xff] }
  0x12   :  { %v52_v12 = vrot.slane %v51_v6, 1  ;;  %v59_v13 = vrot.slane %v58_v7, 1  ;;  %v87_v16 = vrot.slane %v86_v8, 2  ;;  %v94_v17 = vrot.slane %v93_v9, 2 }
  0x13   :  { %v100_v18 = vmax.f32 %v98_v0, %v99_v10  ;;  %v107_v19 = vmax.f32 %v105_v1, %v106_v11  ;;  %v125_v35 = vsel %vm16_vm0, %v287_v21, -inf  ;;  %v128_v36 = vsel %vm16_vm0, %v282_v20, -inf }
  0x14   :  { %v401_v24 = vmax.f32 %v51_v6, %v52_v12  ;;  %v403_v25 = vmax.f32 %v58_v7, %v59_v13  ;;  %v88_v26 = vmax.f32 %v86_v8, %v87_v16  ;;  %v95_v27 = vmax.f32 %v93_v9, %v94_v17  ;;  %v294_v6 = vld [vmem:[%s531_s0 + $0xe8] sm:$0xff]  ;;  %v296_v16 = vld [vmem:[%s531_s0 + $0xf8] sm:$0xff] }
  0x15   :  { %v101_v28 = vrot.slane %v100_v18, 2  ;;  %v108_v29 = vrot.slane %v107_v19, 2  ;;  %v126_v42 = vmax.f32 %v122_v14, %v125_v35  ;;  %v129_v43 = vsel %vm16_vm0, %v284_v30, -inf }
  0x16   :  { %v215_v33 = vmax.f32 %v403_v25, %v401_v24  ;;  %v89_v37 = vrot.slane %v88_v26, 1  ;;  %v96_v38 = vrot.slane %v95_v27, 1  ;;  %v130_v44 = vsel %vm16_vm0, %v286_v31, -inf }
  0x17   :  { %v102_v39 = vmax.f32 %v100_v18, %v101_v28  ;;  %v109_v40 = vmax.f32 %v107_v19, %v108_v29  ;;  %v132_v45 = vsel %vm16_vm0, %v288_v32, -inf  ;;  %v127_v52 = vmax.f32 %v124_v34, %v126_v42 }
  0x18   :  { %v427_v47 = vmax.f32 %v88_v26, %v89_v37  ;;  %v429_v48 = vmax.f32 %v95_v27, %v96_v38  ;;  %v131_v53 = vmax.f32 %v128_v36, %v130_v44  ;;  %v133_v54 = vmax.f32 %v129_v43, %v132_v45 }
  0x19   :  { %v103_v49 = vrot.slane %v102_v39, 1  ;;  %v110_v50 = vrot.slane %v109_v40, 1  ;;  %v172_v55 = vsel %vm16_vm0, %v289_v41, -inf  ;;  %v173_v61 = vsel %vm16_vm0, %v291_v46, -inf }
  0x1a   :  { %v216_v56 = vmax.f32 %v215_v33, %v427_v47  ;;  %v134_v62 = vmax.f32 %v131_v53, %v133_v54  ;;  %v135_v63 = vsel %vm31_vm1, %v127_v52, -inf  ;;  %v142_v0 = vsel %vm39_vm2, %v127_v52, -inf }
  0x1b   :  { %v436_v57 = vmax.f32 %v102_v39, %v103_v49  ;;  %v438_v58 = vmax.f32 %v109_v40, %v110_v50  ;;  %v174_v1 = vsel %vm16_vm0, %v293_v51, -inf  ;;  %v136_v3 = vrot.slane %v135_v63, 4 }
  0x1c   :  { %v217_v2 = vmax.f32 %v216_v56, %v429_v48  ;;  %v143_v4 = vrot.slane %v142_v0, 4  ;;  %v175_v7 = vmax.f32 %v172_v55, %v174_v1  ;;  %v149_v8 = vsel %vm31_vm1, %v134_v62, -inf }
  0x1d   :  { %v156_v9 = vsel %vm39_vm2, %v134_v62, -inf  ;;  %v176_v10 = vsel %vm16_vm0, %v295_v60, -inf  ;;  %v179_v11 = vsel %vm16_vm0, %v290_v59, -inf  ;;  %v137_v13 = vmax.f32 %v135_v63, %v136_v3 }
  0x1e   :  { %v218_v12 = vmax.f32 %v217_v2, %v436_v57  ;;  %v144_v14 = vmax.f32 %v142_v0, %v143_v4  ;;  %v150_v15 = vrot.slane %v149_v8, 4  ;;  %v157_v17 = vrot.slane %v156_v9, 4 }
  0x1f   :  { %v177_v18 = vmax.f32 %v173_v61, %v176_v10  ;;  %v180_v19 = vsel %vm16_vm0, %v292_v5, -inf  ;;  %v181_v20 = vsel %vm16_vm0, %v294_v6, -inf  ;;  %v37_v21 = vrot.slane %v397_v22, 1 }
  0x20   :  { %v138_v26 = vrot.slane %v137_v13, 2  ;;  %v145_v27 = vrot.slane %v144_v14, 2  ;;  %v151_v28 = vmax.f32 %v149_v8, %v150_v15  ;;  %v158_v29 = vmax.f32 %v156_v9, %v157_v17 }
  0x21   :  { %v178_v30 = vmax.f32 %v175_v7, %v177_v18  ;;  %v182_v31 = vmax.f32 %v179_v11, %v181_v20  ;;  %v183_v32 = vsel %vm16_vm0, %v296_v16, -inf  ;;  %v219_v37 = vmax.f32 %v218_v12, %v438_v58 }
  0x22   :  { %v139_v33 = vmax.f32 %v137_v13, %v138_v26  ;;  %v146_v34 = vmax.f32 %v144_v14, %v145_v27  ;;  %v152_v35 = vrot.slane %v151_v28, 2  ;;  %v184_v36 = vmax.f32 %v180_v19, %v183_v32 }
  0x23   :  { %v159_v38 = vrot.slane %v158_v29, 2  ;;  %v186_v39 = vsel %vm31_vm1, %v178_v30, -inf  ;;  %v193_v40 = vsel %vm39_vm2, %v178_v30, -inf  ;;  %v45_v45 = vrot.slane %v399_v23, 1 }
  0x24   :  { %v140_v41 = vrot.slane %v139_v33, 1  ;;  %v147_v42 = vrot.slane %v146_v34, 1  ;;  %v153_v43 = vmax.f32 %v151_v28, %v152_v35  ;;  %v185_v44 = vmax.f32 %v182_v31, %v184_v36 }
  0x25   :  { %v160_v46 = vmax.f32 %v158_v29, %v159_v38  ;;  %v187_v49 = vrot.slane %v186_v39, 4  ;;  %v194_v50 = vrot.slane %v193_v40, 4  ;;  %v477_v61 = vmax.f32 %v397_v22, %v37_v21 }
  0x26   :  { %v473_v51 = vmax.f32 %v139_v33, %v140_v41  ;;  %v148_v52 = vmax.f32 %v146_v34, %v147_v42  ;;  %v154_v53 = vrot.slane %v153_v43, 1  ;;  %v200_v54 = vsel %vm31_vm1, %v185_v44, -inf }
  0x27   :  { %v161_v55 = vrot.slane %v160_v46, 1  ;;  %v188_v56 = vmax.f32 %v186_v39, %v187_v49  ;;  %v195_v59 = vmax.f32 %v193_v40, %v194_v50  ;;  %v201_v60 = vrot.slane %v200_v54, 4 }
  0x28   :  { %v220_v62 = vmax.f32 %v219_v37, %v473_v51  ;;  %v155_v63 = vmax.f32 %v153_v43, %v154_v53  ;;  %v207_v0 = vsel %vm39_vm2, %v185_v44, -inf  ;;  %v482_v1 = vmax.f32 %v399_v23, %v45_v45 }
  0x29   :  { %v189_v2 = vrot.slane %v188_v56, 2  ;;  %v196_v3 = vrot.slane %v195_v59, 2  ;;  %v202_v4 = vmax.f32 %v200_v54, %v201_v60  ;;  %v162_v6 = vmax.f32 %v160_v46, %v161_v55 }
  0x2a   :  { %v221_v5 = vmax.f32 %v220_v62, %v148_v52  ;;  %v208_v7 = vrot.slane %v207_v0, 4  ;;  %v214_v23 = vmax.f32 %v477_v61, %v482_v1  ;;  %v231_v17 = vmax.f32 %v401_v24, %v403_v25 }
  0x2b   :  { %v190_v8 = vmax.f32 %v188_v56, %v189_v2  ;;  %v197_v9 = vmax.f32 %v195_v59, %v196_v3  ;;  %v203_v10 = vrot.slane %v202_v4, 2  ;;  %v234_v18 = vmax.f32 %v473_v51, %v148_v52 }
  0x2c   :  { %v222_v22 = vmax.f32 %v221_v5, %v155_v63  ;;  %v209_v11 = vmax.f32 %v207_v0, %v208_v7  ;;  %v254_v26 = vsel %vm240_vm3, %v403_v25, %v427_v47  ;;  %v237_v28 = vmax.f32 %v155_v63, %v162_v6 }
  0x2d   :  { %v191_v12 = vrot.slane %v190_v8, 1  ;;  %v198_v13 = vrot.slane %v197_v9, 1  ;;  %v204_v14 = vmax.f32 %v202_v4, %v203_v10  ;;  %vm248_vm7 = vcmask 1044480  }
  0x2e   :  { %v223_v15 = vmax.f32 %v222_v22, %v162_v6  ;;  %v210_v16 = vrot.slane %v209_v11, 2  ;;  %v255_v29 = vsel %vm242_vm4, %v254_v26, %v429_v48  ;;  %vm250_vm8 = vcmask 1045504  }
  0x2f   :  { %v192_v19 = vmax.f32 %v190_v8, %v191_v12  ;;  %v199_v20 = vmax.f32 %v197_v9, %v198_v13  ;;  %v205_v21 = vrot.slane %v204_v14, 1  ;;  %v256_v32 = vsel %vm244_vm5, %v255_v29, %v436_v57 }
  0x30   :  { %v211_v27 = vmax.f32 %v209_v11, %v210_v16  ;;  %vm252_vm9 = vcmask 1046528   ;;  %v257_v34 = vsel %vm246_vm6, %v256_v32, %v438_v58  ;;  %v229_v36 = vmax.f32 %v214_v23, %v427_v47 }
  0x31   :  { %v224_v30 = vmax.f32 %v223_v15, %v192_v19  ;;  %v206_v31 = vmax.f32 %v204_v14, %v205_v21  ;;  %v261_v35 = vsel %vm240_vm3, %v162_v6, %v192_v19  ;;  %v232_v37 = vmax.f32 %v231_v17, %v436_v57 }
  0x32   :  { %v212_v33 = vrot.slane %v211_v27, 1  ;;  %v258_v38 = vsel %vm248_vm7, %v257_v34, %v473_v51  ;;  %v262_v41 = vsel %vm242_vm4, %v261_v35, %v199_v20  ;;  %vm267_vm10 = vcmask 61440  }
  0x33   :  { %v225_v25 = vmax.f32 %v224_v30, %v199_v20  ;;  %v259_v40 = vsel %vm250_vm8, %v258_v38, %v148_v52  ;;  %v235_v43 = vmax.f32 %v234_v18, %v192_v19  ;;  %v263_v45 = vsel %vm244_vm5, %v262_v41, %v206_v31 }
  0x34   :  { %v213_v39 = vmax.f32 %v211_v27, %v212_v33  ;;  %v260_v44 = vsel %vm252_vm9, %v259_v40, %v155_v63  ;;  %v238_v46 = vmax.f32 %v237_v28, %v206_v31  ;;  %v230_v49 = vmax.f32 %v229_v36, %v429_v48 }
  0x35   :  { %v226_v42 = vmax.f32 %v225_v25, %v206_v31  ;;  %266 = vst.msk [vmem:[%s532_s1 + $0x8] sm:$0xff] %vm16_vm0, %v260_v44  ;;  %v233_v50 = vmax.f32 %v232_v37, %v438_v58  ;;  %v236_v52 = vmax.f32 %v235_v43, %v199_v20 }
  0x36   :  { %v264_v47 = vsel %vm246_vm6, %v263_v45, %v213_v39  ;;  %v239_v53 = vmax.f32 %v238_v46, %v213_v39 }
  0x37   :  { %v227_v57 = vmax.f32 %v226_v42, %v213_v39  ;;  %268 = vst.msk [vmem:[%s532_s1 + $0x10] sm:$0x1f] %vm267_vm10, %v264_v47 }
  0x39   :  { %v228_v51 = vmax.f32 %v227_v57, %v214_v23 }
  0x3b   :  { %v241_v54 = vsel %vm240_vm3, %v228_v51, %v230_v49 }
  0x3c   :  { %v243_v55 = vsel %vm242_vm4, %v241_v54, %v233_v50 }
  0x3d   :  { %v245_v56 = vsel %vm244_vm5, %v243_v55, %v236_v52 }
  0x3e   :  { %v247_v59 = vsel %vm246_vm6, %v245_v56, %v239_v53 }
  0x3f   :  { %v249_v48 = vsel %vm248_vm7, %v247_v59, %v477_v61 }
  0x40   :  { %v251_v60 = vsel %vm250_vm8, %v249_v48, %v482_v1 }
  0x41   :  { %v253_v58 = vsel %vm252_vm9, %v251_v60, %v401_v24 }
  0x42   :  { %265 = vst.msk [vmem:[%s532_s1] sm:$0xff] %vm16_vm0, %v253_v58 }

</bundles_post_ra>
